<compile_context>
chip_gen: v7x
topology: tpu7x:2x2x1
jax: 0.10.0
libtpu: 0.0.40
codegen_flags: <defaults>
</compile_context>

<pallas_src>
import jax
import jax.numpy as jnp
from jax.experimental import pallas as pl
from jax.experimental.pallas import tpu as pltpu


def _cdiv(a, b):
    return -(-a // b)


def _round_up(x, m):
    return _cdiv(x, m) * m


def _choose_tm(M, block_m, *, sub=16, min_steps=2):
    """Pick a row-tile size: multiple of `sub`, capped by block_m, >= min_steps tiles."""
    cap = max(sub, (block_m // sub) * sub)          # enforce sublane multiple
    if M <= sub * min_steps:
        return _round_up(M, sub)                    # tiny input: single tile
    return min(cap, _round_up(_cdiv(M, min_steps), sub))


# ---------------------------------------------------------------------------
# Kernels
# ---------------------------------------------------------------------------

def _two_layer_kernel(x_ref, w1_ref, b1_ref, w2_ref, b2_ref, o_ref):
    # Cast the loaded x tile to the MXU compute dtype (weights' dtype) in VMEM.
    x = x_ref[...].astype(w1_ref.dtype)
    h = jnp.dot(x, w1_ref[...], preferred_element_type=jnp.float32)
    h = h + b1_ref[...]
    h = h.astype(w2_ref.dtype)
    y = jnp.dot(h, w2_ref[...], preferred_element_type=jnp.float32)
    y = y + b2_ref[...]
    o_ref[...] = y.astype(o_ref.dtype)


def _fused_kernel(x_ref, w_ref, b_ref, o_ref):
    x = x_ref[...].astype(w_ref.dtype)
    y = jnp.dot(x, w_ref[...], preferred_element_type=jnp.float32) + b_ref[...]
    o_ref[...] = y.astype(o_ref.dtype)


# ---------------------------------------------------------------------------
# Parameter preparation (run ONCE, not per forward call)
# ---------------------------------------------------------------------------

def prepare_params(w1, b1, w2, b2, *, compute_dtype=jnp.bfloat16, fuse=False):
    """Cast weights to the MXU dtype, reshape biases to (1, D), optionally fuse.

    w1: (input_dim, hidden_dim), w2: (hidden_dim, output_dim)
    (transposed w.r.t. PyTorch Linear.weight).
    """
    if fuse:
        w_eff = jnp.dot(w1.astype(jnp.float32), w2.astype(jnp.float32))
        b_eff = jnp.dot(b1.astype(jnp.float32), w2.astype(jnp.float32)) + b2.astype(jnp.float32)
        return (w_eff.astype(compute_dtype), b_eff.reshape(1, -1).astype(jnp.float32))
    return (w1.astype(compute_dtype),
            b1.reshape(1, -1).astype(jnp.float32),
            w2.astype(compute_dtype),
            b2.reshape(1, -1).astype(jnp.float32))


# ---------------------------------------------------------------------------
# Forward
# ---------------------------------------------------------------------------

def reversal_classifier_forward(x, params, *, block_m=2048, out_dtype=None):
    """Forward pass of ReversalClassifier.

    Args:
      x: (B, T, input_dim)
      params: output of prepare_params() -- either
              (w1, b1, w2, b2) for the exact two-matmul path, or
              (w_eff, b_eff) for the fused single-matmul path.
      block_m: row-tile cap (rows of B*T per grid step)
      out_dtype: output dtype (default: x.dtype)

    Returns:
      (B, T, output_dim) in out_dtype
    """
    B, T, D_in = x.shape
    M = B * T
    out_dtype = x.dtype if out_dtype is None else out_dtype

    x2d = x.reshape(M, D_in)            # free reshape: no copy, no pad, no cast
    tm = _choose_tm(M, block_m)
    grid = (_cdiv(M, tm),)              # last block may be partial -> masked stores

    fused = len(params) == 2
    if fused:
        w_eff, b_eff = params
        D_out = w_eff.shape[1]
        kernel = _fused_kernel
        operands = (x2d, w_eff, b_eff)
        in_specs = [
            # x: one row tile per grid step (pipelined); last dim = full extent.
            pl.BlockSpec((tm, D_in), lambda i: (i, 0)),
            # Weights / bias: constant block index -> resident in VMEM.
            pl.BlockSpec(w_eff.shape, lambda i: (0, 0)),
            pl.BlockSpec(b_eff.shape, lambda i: (0, 0)),
        ]
    else:
        w1, b1, w2, b2 = params
        D_out = w2.shape[1]
        kernel = _two_layer_kernel
        operands = (x2d, w1, b1, w2, b2)
        in_specs = [
            pl.BlockSpec((tm, D_in), lambda i: (i, 0)),
            pl.BlockSpec(w1.shape, lambda i: (0, 0)),
            pl.BlockSpec(b1.shape, lambda i: (0, 0)),
            pl.BlockSpec(w2.shape, lambda i: (0, 0)),
            pl.BlockSpec(b2.shape, lambda i: (0, 0)),
        ]

    out = pl.pallas_call(
        kernel,
        out_shape=jax.ShapeDtypeStruct((M, D_out), out_dtype),
        grid_spec=pltpu.PrefetchScalarGridSpec(
            num_scalar_prefetch=0,
            grid=grid,
            in_specs=in_specs,
            # Output block last dim = full extent (D_out): no 128-padding,
            # no wrapper slice pass afterwards.
            out_specs=pl.BlockSpec((tm, D_out), lambda i: (i, 0)),
        ),
        compiler_params=pltpu.CompilerParams(
            dimension_semantics=("parallel",),   # independent row tiles (megacore)
        ),
    )(*operands)

    return out.reshape(B, T, D_out)


# ---------------------------------------------------------------------------
# Init / reference / self-test
# ---------------------------------------------------------------------------

def init_params(key, input_dim, hidden_dim, output_dim):
    """PyTorch-Linear-style init (U[-1/sqrt(fan_in), 1/sqrt(fan_in)]), transposed layout."""
    k1, k2, k3, k4 = jax.random.split(key, 4)
    bound1 = 1.0 / (input_dim ** 0.5)
    bound2 = 1.0 / (hidden_dim ** 0.5)
    w1 = jax.random.uniform(k1, (input_dim, hidden_dim), jnp.float32, -bound1, bound1)
    b1 = jax.random.uniform(k2, (hidden_dim,), jnp.float32, -bound1, bound1)
    w2 = jax.random.uniform(k3, (hidden_dim, output_dim), jnp.float32, -bound2, bound2)
    b2 = jax.random.uniform(k4, (output_dim,), jnp.float32, -bound2, bound2)
    return w1, b1, w2, b2


def _reference_f32(x, w1, b1, w2, b2):
    B, T, D_in = x.shape
    y = (x.reshape(B * T, D_in) @ w1 + b1) @ w2 + b2
    return y.reshape(B, T, -1)


if __name__ == "__main__":
    # Small shapes consistent with the module: (batch, seq, input_dim).
    B, T = 2, 8
    input_dim, hidden_dim, output_dim = 32, 32, 16

    key = jax.random.PRNGKey(0)
    kx, kp = jax.random.split(key)
    x = jax.random.normal(kx, (B, T, input_dim), jnp.float32)
    w1, b1, w2, b2 = init_params(kp, input_dim, hidden_dim, output_dim)
    y_ref = _reference_f32(x, w1, b1, w2, b2)

    # 1) Exact-parity path: f32 compute, two matmuls.
    params_f32 = prepare_params(w1, b1, w2, b2, compute_dtype=jnp.float32)
    y_f32 = jax.block_until_ready(reversal_classifier_forward(x, params_f32))
    assert y_f32.shape == (B, T, output_dim)
    assert jnp.allclose(y_f32, y_ref, atol=1e-5, rtol=1e-5)

    # 2) Default deployment path: bf16 MXU inputs, f32 accumulation.
    params_bf16 = prepare_params(w1, b1, w2, b2, compute_dtype=jnp.bfloat16)
    y_bf16 = jax.block_until_ready(reversal_classifier_forward(x, params_bf16))
    assert jnp.allclose(y_bf16, y_ref, atol=5e-2, rtol=5e-2)

    # 3) Fused single-matmul forward (W_eff = W1 @ W2), f32.
    params_fused = prepare_params(w1, b1, w2, b2, compute_dtype=jnp.float32, fuse=True)
    y_fused = jax.block_until_ready(reversal_classifier_forward(x, params_fused))
    assert jnp.allclose(y_fused, y_ref, atol=1e-4, rtol=1e-4)

    # 4) Multi-tile path with a partial last block (masked stores):
    #    M = 100 rows, tile cap 32 -> grid of 4, last block covers only 4 rows.
    B2, T2 = 4, 25
    x2 = jax.random.normal(kx, (B2, T2, input_dim), jnp.float32)
    y_tiled = jax.block_until_ready(
        reversal_classifier_forward(x2, params_f32, block_m=32))
    y_tiled_ref = _reference_f32(x2, w1, b1, w2, b2)
    assert y_tiled.shape == (B2, T2, output_dim)
    assert jnp.allclose(y_tiled, y_tiled_ref, atol=1e-5, rtol=1e-5)

    # TODO(synk): ReversalClassifier.loss (masked cross-entropy) and the
    # gradient-reversal / clipping backward are training-time utilities outside
    # forward(); implemented in plain JAX if needed, not as Pallas kernels.

    print("KERNEL_OK")
</pallas_src>

<mosaic_0001>
module attributes {stable_mosaic.version = 11 : i64} {
  func.func @_two_layer_kernel(%arg0: i32, %arg1: memref<16x32xf32, #tpu.memory_space<vmem>>, %arg2: memref<32x32xf32, #tpu.memory_space<vmem>>, %arg3: memref<1x32xf32, #tpu.memory_space<vmem>>, %arg4: memref<32x16xf32, #tpu.memory_space<vmem>>, %arg5: memref<1x16xf32, #tpu.memory_space<vmem>>, %arg6: memref<16x16xf32, #tpu.memory_space<vmem>>) attributes {dimension_semantics = [#tpu.dimension_semantics<parallel>], iteration_bounds = array<i64: 1>, scalar_prefetch = 0 : i64, scratch_operands = 0 : i64, tpu.core_type = #tpu.core_type<tc>, window_params = [{transform_indices = @transform_0, window_bounds = array<i64: 16, 32>}, {pipeline_mode = #tpu.pipeline_mode<synchronous>, transform_indices = @transform_1, window_bounds = array<i64: 32, 32>}, {pipeline_mode = #tpu.pipeline_mode<synchronous>, transform_indices = @transform_2, window_bounds = array<i64: 1, 32>}, {pipeline_mode = #tpu.pipeline_mode<synchronous>, transform_indices = @transform_3, window_bounds = array<i64: 32, 16>}, {pipeline_mode = #tpu.pipeline_mode<synchronous>, transform_indices = @transform_4, window_bounds = array<i64: 1, 16>}, {transform_indices = @transform_5, window_bounds = array<i64: 16, 16>}]} {
    %c0 = arith.constant 0 : index
    %c0_0 = arith.constant 0 : index
    %0 = vector.load %arg1[%c0, %c0_0] : memref<16x32xf32, #tpu.memory_space<vmem>>, vector<16x32xf32>
    %c0_1 = arith.constant 0 : index
    %c0_2 = arith.constant 0 : index
    %1 = vector.load %arg2[%c0_1, %c0_2] : memref<32x32xf32, #tpu.memory_space<vmem>>, vector<32x32xf32>
    %cst = arith.constant dense<0.000000e+00> : vector<16x32xf32>
    %2 = tpu.matmul %0, %1, %cst {dimension_numbers = #tpu.dot_dimension_numbers<[1], [0], [0], [1], [0, 0, 1, 1], [], []>} : vector<16x32xf32>, vector<32x32xf32>, vector<16x32xf32> -> vector<16x32xf32>
    %c0_3 = arith.constant 0 : index
    %c0_4 = arith.constant 0 : index
    %3 = vector.load %arg3[%c0_3, %c0_4] : memref<1x32xf32, #tpu.memory_space<vmem>>, vector<1x32xf32>
    %4 = vector.broadcast %3 : vector<1x32xf32> to vector<16x32xf32>
    %5 = arith.addf %2, %4 : vector<16x32xf32>
    %c0_5 = arith.constant 0 : index
    %c0_6 = arith.constant 0 : index
    %6 = vector.load %arg4[%c0_5, %c0_6] : memref<32x16xf32, #tpu.memory_space<vmem>>, vector<32x16xf32>
    %cst_7 = arith.constant dense<0.000000e+00> : vector<16x16xf32>
    %7 = tpu.matmul %5, %6, %cst_7 {dimension_numbers = #tpu.dot_dimension_numbers<[1], [0], [0], [1], [0, 0, 1, 1], [], []>} : vector<16x32xf32>, vector<32x16xf32>, vector<16x16xf32> -> vector<16x16xf32>
    %c0_8 = arith.constant 0 : index
    %c0_9 = arith.constant 0 : index
    %8 = vector.load %arg5[%c0_8, %c0_9] : memref<1x16xf32, #tpu.memory_space<vmem>>, vector<1x16xf32>
    %9 = vector.broadcast %8 : vector<1x16xf32> to vector<16x16xf32>
    %10 = arith.addf %7, %9 : vector<16x16xf32>
    %c0_10 = arith.constant 0 : index
    %c0_11 = arith.constant 0 : index
    %11 = vector.load %arg6[%c0_10, %c0_11] : memref<16x16xf32, #tpu.memory_space<vmem>>, vector<16x16xf32>
    tpu.vector_store %arg6[%c0_10, %c0_11], %10 {strides = array<i32>} : memref<16x16xf32, #tpu.memory_space<vmem>>, vector<16x16xf32>,
    return
  }
  func.func @transform_0(%arg0: i32) -> (i32, i32) {
    %c0_i32 = arith.constant 0 : i32
    %c0_i32_0 = arith.constant 0 : i32
    return %arg0, %c0_i32 : i32, i32
  }
  func.func @transform_1(%arg0: i32) -> (i32, i32) {
    %c0_i32 = arith.constant 0 : i32
    %c0_i32_0 = arith.constant 0 : i32
    %c0_i32_1 = arith.constant 0 : i32
    return %c0_i32, %c0_i32_0 : i32, i32
  }
  func.func @transform_2(%arg0: i32) -> (i32, i32) {
    %c0_i32 = arith.constant 0 : i32
    %c0_i32_0 = arith.constant 0 : i32
    %c0_i32_1 = arith.constant 0 : i32
    return %c0_i32, %c0_i32_0 : i32, i32
  }
  func.func @transform_3(%arg0: i32) -> (i32, i32) {
    %c0_i32 = arith.constant 0 : i32
    %c0_i32_0 = arith.constant 0 : i32
    %c0_i32_1 = arith.constant 0 : i32
    return %c0_i32, %c0_i32_0 : i32, i32
  }
  func.func @transform_4(%arg0: i32) -> (i32, i32) {
    %c0_i32 = arith.constant 0 : i32
    %c0_i32_0 = arith.constant 0 : i32
    %c0_i32_1 = arith.constant 0 : i32
    return %c0_i32, %c0_i32_0 : i32, i32
  }
  func.func @transform_5(%arg0: i32) -> (i32, i32) {
    %c0_i32 = arith.constant 0 : i32
    %c0_i32_0 = arith.constant 0 : i32
    return %arg0, %c0_i32 : i32, i32
  }
}

</mosaic_0001>

<bundles_post_ra>
// kernel: tpu_custom_call.1
= control target key start
LH: loop header
LB: loop body
LE: loop exit
PB: predicated region body
PF: predicated region fallthrough
CT: control target
= control target key end

     0   :  { %vm34_vm0 = vcmask 261120   ;;  %s395_s0 = inlined_call_operand.vmem [shape: f32[16,32], index: 0, kind: input, shape index: {}]   ;;  %s396_s1 = inlined_call_operand.vmem [shape: f32[32,32], index: 1, kind: input, shape index: {}]   ;;  %s397_s2 = inlined_call_operand.vmem [shape: f32[1,32], index: 2, kind: input, shape index: {}]   ;;  %s398_s3 = inlined_call_operand.vmem [shape: f32[32,16], index: 3, kind: input, shape index: {}]   ;;  %s399_s4 = inlined_call_operand.vmem [shape: f32[1,16], index: 4, kind: input, shape index: {}]   ;;  %s400_s5 = inlined_call_operand.hbm [shape: f32[16,16], index: 5, kind: output, shape index: {}]  }
   0x1   :  { %v23_v0 = vld [vmem:[%s396_s1] sm:$0xff]  ;;  %v24_v1 = vld [vmem:[%s396_s1 + $0x8] sm:$0xff]  ;;  %v25_v2 = vld [vmem:[%s396_s1 + $0x10] sm:$0xff] }
   0x2   :  { %v267_v3 = vpack.c.bf16 %v24_v1, %v23_v0  ;;  %v26_v4 = vld [vmem:[%s396_s1 + $0x18] sm:$0xff]  ;;  %v21_v5 = vld [vmem:[%s395_s0] sm:$0xff]  ;;  %v117_v8 = vld [vmem:[%s398_s3 + $0x8] sm:$0xff] }
   0x3   :  { %v271_v6 = vpack.c.bf16 %v26_v4, %v25_v2  ;;  %253 = vmatprep.mubr.msk.f32.mxu0 %vm34_vm0, %v21_v5  ;;  %v116_v7 = vld [vmem:[%s398_s3] sm:$0xff] }
   0x4   :  { %10 = vsyncpa [#allocation3], 0  ;;  %268 = vmatprep.subr.bf16.mxu0 %v267_v3  ;;  %v275_v9 = vpack.c.bf16 %v117_v8, %v116_v7  ;;  %v22_v10 = vld [vmem:[%s395_s0 + $0x8] sm:$0xff]  ;;  %v118_v11 = vld [vmem:[%s398_s3 + $0x10] sm:$0xff]  ;;  %vm208_vm1 = vcmask 130048  }
   0x5   :  { %270 = vmatpush3.bf16.msra.mxu0 %v267_v3  ;;  %v119_v12 = vld [vmem:[%s398_s3 + $0x18] sm:$0xff]  ;;  %v227_v14 = vld [vmem:[%s397_s2] ss:$0 sm:$0xff]  ;;  %s310_s3 = smov [#allocation2]  }
   0x6   :  { %272 = vmatprep.subr.bf16.mxu0 %v271_v6  ;;  %276 = vmatprep.subr.bf16.mxu1 %v275_v9  ;;  %v279_v13 = vpack.c.bf16 %v119_v12, %v118_v11  ;;  %v230_v19 = vld [vmem:[%s399_s4] ss:$0 sm:$0xff]  ;;  %s216_s15 = sshll.u32 %s310_s3, 4  ;;  %s217_s15 = int_to_ptr.vmem [resolvable:$true] %s216_s15 }
   0x7   :  { %278 = vmatpush3.bf16.msra.mxu1 %v275_v9  ;;  %s286_s2 = scalar_lea.vmem %s217_s15, 256  ;;  %p291_p1 = scmp.lt.s32.totalorder %s217_s15, %s217_s15 }
   0x8   :  { %280 = vmatprep.subr.bf16.mxu1 %v279_v13  ;;  %p287_p0 = scmp.ne.s32.totalorder %s217_s15, %s286_s2  ;;  %p292_p2 = scmp.lt.s32.totalorder %s286_s2, %s286_s2 }
   0x9   :  { %274 = vmatpush3.bf16.msra.mxu0 %v271_v6 }
   0xa   :  { %p293_p3 = por %p292_p2, %p291_p1 }
   0xb   :  { %282 = vmatpush3.bf16.msra.mxu1 %v279_v13 }
   0xc   :  { %254 = vmatmul.mubr.msk.f32.vlgmr.msra.gmra.mrb[0].mxu0 %vm34_vm0, %v22_v10  ;;  %p294_p4 = pnand %p293_p3, %p287_p0 }
  0xdf   :  { %v255_v15 = vpop.f32.mrb[0].mxu0 }
  0xe0   :  { %v107_v16 = vpop.f32.mrb[1].mxu0  ;;  %v113_v18 = vadd.f32 %v255_v15, %v227_v14 }
  0xe1   :  { %v108_v17 = vadd.f32 %v227_v14, %v107_v16 }
  0xe3   :  { %264 = vmatprep.mubr.msk.f32.mxu1 %vm34_vm0, %v108_v17 }
  0xe4   :  { %265 = vmatmul.mubr.msk.f32.vlgmr.msra.gmra.mrb[0].mxu1 %vm34_vm0, %v113_v18 }
 0x1b7   :  { %v266_v20 = vpop.f32.mrb[0].mxu1 }
 0x1b8   :  { %v205_v21 = vadd.f32 %v266_v20, %v230_v19  ;;  %v199_v22 = vpop.f32.mrb[1].mxu1 }
 0x1b9   :  { %v200_v23 = vadd.f32 %v230_v19, %v199_v22 }
 0x1ba   :  { %210 = vst.msk [vmem:[#allocation2 + $0x8] sm:$0xff] %vm208_vm1, %v205_v21 }
 0x1bb   :  { %209 = vst.msk [vmem:[#allocation2] sm:$0xff] %vm208_vm1, %v200_v23 }
 0x1bc   :  { %297 = shalt.err (!%p294_p4)
}
 0x1bd   :  { %s298_s4 = scalar_lea.hbm %s400_s5, 256 }
 0x1be   :  { %p299_p5 = scmp.ne.s32.totalorder %s400_s5, %s298_s4  ;;  %p302_p6 = scmp.lt.u32.totalorder %s298_s4, %s400_s5 }
 0x1c0   :  { %p304_p7 = pnand %p302_p6, %p299_p5 }
 0x1c2   :  { %307 = shalt.err (!%p304_p7)
}
 0x1c3   :  { %s311_s22 = smov 128   ;;  %s312_s23 = smov 8  }
 0x1c4   :  { %222 = dma.vmem_to_hbm [thread:$0]  %s217_s15, 256, %s400_s5, [#allocation3], %s311_s22, %s311_s22, %s312_s23  }
 0x1c5   :  { %308 = dma.done.wait [#allocation3], 256  }
 0x1c6   :  { %309 = vsyncadd [#allocation3], 4294967040 }
 0x1c7   :  { %226 = vsyncpa [#allocation3], 1 }

</bundles_post_ra>
